<compile_context>
chip_gen: v5e
topology: v5e:2x2
jax: 0.10.0
libtpu: 0.0.40
codegen_flags: <defaults>
</compile_context>

<pallas_src>
import functools
import math

import jax
import jax.numpy as jnp
from jax import lax
from jax.experimental import pallas as pl
from jax.experimental.pallas import tpu as pltpu


def _round_up(x, m):
    return ((x + m - 1) // m) * m


# ----------------------------------------------------------------------------
# Kernel: full PredictionHead + ScaleExp.  Grid = (num_levels,), one FPN level
# (all batch elements, rows stacked) per grid step.
# ----------------------------------------------------------------------------
def clsloc_head_kernel(
    scale_ref,    # (L,)  f32  SMEM  per-level ScaleExp scale
    tlen_ref,     # (L,)  i32  SMEM  per-level valid length
    invn_ref,     # (L,)  f32  SMEM  per-level 1 / (T_valid * C/G)
    x_ref,        # (1, B, Tmax, C) f32 input features (BTC layout, zero-padded in T)
    ltw_ref,      # (NT, 3, C, C)  loc tower conv weights (tap k multiplies x[t+k-1])
    ltb_ref,      # (NT, 1, C)     loc tower biases
    lg_ref,       # (NT, 1, C)     loc tower GN gamma
    lbt_ref,      # (NT, 1, C)     loc tower GN beta
    ctw_ref,      # (NT, 3, C, C)  conf tower conv weights
    ctb_ref,      # (NT, 1, C)
    cg_ref,       # (NT, 1, C)
    cbt_ref,      # (NT, 1, C)
    lhw_ref,      # (3, C, P)  loc head weight  (nonzero cols [0:2))
    chw_ref,      # (3, C, P)  conf head weight (nonzero cols [2:2+NC))
    hb_ref,       # (1, P)     fused head bias (f32)
    gm_ref,       # (C, G)     one-hot channel->group matrix (f32)
    gmt_ref,      # (G, C)     its transpose (f32)
    out_ref,      # (1, B, Tmax, P)  cols [0:2) = exp(scale*loc), [2:2+NC) = conf
    *, roll_like_jnp: bool,
):
    lvl = pl.program_id(0)
    scale = scale_ref[lvl]
    t_valid = tlen_ref[lvl]
    inv_n = invn_ref[lvl]

    _, B, Tmax, C = x_ref.shape
    BT = B * Tmax
    n_tower = ltw_ref.shape[0]
    cdt = ltw_ref.dtype                      # MXU operand dtype (bf16 in production)
    P = out_ref.shape[-1]

    # roll(h, sh_prev)[t] == h[t-1]; roll(h, sh_next)[t] == h[t+1]
    if roll_like_jnp:
        sh_prev, sh_next = 1, BT - 1
    else:                                    # defensive: opposite rotate convention
        sh_prev, sh_next = BT - 1, 1

    # ---- hoisted constants (JAX does not CSE broadcasts) --------------------
    gmat = gm_ref[...]
    gmat_t = gmt_ref[...]
    t_loc = lax.broadcasted_iota(jnp.int32, (Tmax, 1), 0)
    t_in = jnp.concatenate([t_loc] * B, axis=0)                    # (BT,1) time idx within sample
    valid = (t_in < t_valid).astype(jnp.float32)                   # real timestep of this level
    has_prev = (t_in > 0).astype(jnp.float32)                      # t-1 exists in same sample
    has_next = (t_in < t_valid - 1).astype(jnp.float32)            # t+1 exists in same sample

    # Stack the batch along rows: rows [b*Tmax, (b+1)*Tmax) hold sample b (M = B*Tmax).
    x = jnp.concatenate([x_ref[0, b] for b in range(B)], axis=0)   # (BT, C) f32

    def make_taps(h):
        # Conv1d(k=3, pad=1) taps via XLU sublane rotations + boundary masks; no (T,3C)
        # or (T+2,C) materialisation.  h is f32 and zero on padded rows; cast to the MXU
        # dtype once per tap (f32 accumulation happens inside the dots).
        return ((pltpu.roll(h, sh_prev, axis=0) * has_prev).astype(cdt),
                h.astype(cdt),
                (pltpu.roll(h, sh_next, axis=0) * has_next).astype(cdt))

    def conv(taps, w3, bias):
        # One k=3 conv == 3 accumulating (BT, C) @ (C, Cout) MXU matmuls.
        y = jnp.dot(taps[0], w3[0], preferred_element_type=jnp.float32)
        y = y + jnp.dot(taps[1], w3[1], preferred_element_type=jnp.float32)
        y = y + jnp.dot(taps[2], w3[2], preferred_element_type=jnp.float32)
        return y + bias

    def gn_relu(y, gamma, beta):
        # Per-sample GroupNorm over the level's valid rows (f32 stats), ReLU, then
        # re-zero padded rows so the next conv sees exact zero padding at the boundary.
        ym = y * valid
        outs = []
        for b in range(B):
            yb = ym[b * Tmax:(b + 1) * Tmax]                       # (Tmax, C) static slice
            s = jnp.sum(yb, axis=0, keepdims=True)                 # (1, C)
            sq = jnp.sum(yb * yb, axis=0, keepdims=True)           # (1, C)
            st = jnp.concatenate([s, sq], axis=0)                  # (2, C)
            st = jnp.dot(st, gmat, preferred_element_type=jnp.float32)          # (2, G)
            st = jnp.dot(st, gmat_t, preferred_element_type=jnp.float32) * inv_n  # (2, C)
            mean = st[0:1]
            var = jnp.maximum(st[1:2] - mean * mean, 0.0)          # guard tiny negatives
            a = gamma * lax.rsqrt(var + 1e-5)
            outs.append(yb * a + (beta - mean * a))
        return jnp.maximum(jnp.concatenate(outs, axis=0), 0.0) * valid

    # ---- two conv towers; layer-0 taps of x are shared by both towers -------
    x_taps = make_taps(x)
    loc_h = gn_relu(conv(x_taps, ltw_ref[0], ltb_ref[0]), lg_ref[0], lbt_ref[0])
    conf_h = gn_relu(conv(x_taps, ctw_ref[0], ctb_ref[0]), cg_ref[0], cbt_ref[0])
    for l in range(1, n_tower):
        loc_h = gn_relu(conv(make_taps(loc_h), ltw_ref[l], ltb_ref[l]), lg_ref[l], lbt_ref[l])
        conf_h = gn_relu(conv(make_taps(conf_h), ctw_ref[l], ctb_ref[l]), cg_ref[l], cbt_ref[l])

    # ---- fused, lane-dense heads: cols [0:2) loc, [2:2+NC) conf --------------
    loc_taps = make_taps(loc_h)
    conf_taps = make_taps(conf_h)
    logits = hb_ref[...]                                           # (1, P) f32, broadcasts
    for k in range(3):
        logits = logits + jnp.dot(loc_taps[k], lhw_ref[k], preferred_element_type=jnp.float32)
        logits = logits + jnp.dot(conf_taps[k], chw_ref[k], preferred_element_type=jnp.float32)

    col = lax.broadcasted_iota(jnp.int32, (1, P), 1)
    out = jnp.where(col < 2, jnp.exp(scale * logits), logits)      # ScaleExp on loc cols only
    for b in range(B):
        out_ref[0, b] = out[b * Tmax:(b + 1) * Tmax]


# ----------------------------------------------------------------------------
# Wrapper: one pallas_call for all FPN levels, whole batch per grid step.
# ----------------------------------------------------------------------------
_MXU_KEYS = ("loc_tw", "conf_tw", "loc_hw", "conf_hw")
_WEIGHT_KEYS = ("loc_tw", "loc_tb", "loc_g", "loc_bt",
                "conf_tw", "conf_tb", "conf_g", "conf_bt",
                "loc_hw", "conf_hw", "head_b", "gm", "gmt")

_ROLL_LIKE_JNP = None


def _probe_roll_convention():
    """pltpu.roll is specified to match jnp.roll; probe it once on-device so the conv
    tap shifts stay correct even if the rotate convention ever differs."""
    global _ROLL_LIKE_JNP
    if _ROLL_LIKE_JNP is None:
        def k(x_ref, o_ref):
            o_ref[...] = pltpu.roll(x_ref[...], 1, axis=0)
        x = jnp.arange(8 * 128, dtype=jnp.float32).reshape(8, 128)
        y = pl.pallas_call(k, out_shape=jax.ShapeDtypeStruct((8, 128), jnp.float32))(x)
        _ROLL_LIKE_JNP = bool(jnp.allclose(y, jnp.roll(x, 1, axis=0)))
    return _ROLL_LIKE_JNP


def cls_loc_head_forward(fpn_feats_nct, params, scales, num_classes,
                         mxu_dtype=jnp.bfloat16):
    """fpn_feats_nct: list of (B, C, T) arrays (PyTorch NCT layout)."""
    L = len(fpn_feats_nct)
    B, C, _ = fpn_feats_nct[0].shape
    Ts = [int(f.shape[2]) for f in fpn_feats_nct]
    Tmax = _round_up(max(Ts), 16)          # 16: sublane packing for bf16 MXU operands
    out_pad = params["out_pad"]
    Cg = C // params["_groups"]

    # Host glue: NCT -> (L, B, Tmax, C); XLA fuses transpose+pad+stack into one copy pass.
    # TODO(synk): bucket levels by T (AFSD halves T per level) so padding every level to a
    # global Tmax stops costing ~2-3x tower FLOPs on deep pyramids.
    x_all = jnp.stack(
        [jnp.pad(jnp.transpose(f, (0, 2, 1)),
                 ((0, 0), (0, Tmax - f.shape[2]), (0, 0)))
         for f in fpn_feats_nct], axis=0)                    # (L, B, Tmax, C)

    scale_arr = jnp.asarray(scales, jnp.float32)             # (L,)
    tlen_arr = jnp.asarray(Ts, jnp.int32)                    # (L,)
    invn_arr = jnp.asarray([1.0 / (t * Cg) for t in Ts], jnp.float32)

    # MXU-facing weights in the requested (bf16) dtype; GN params / biases / one-hots f32.
    weights = [params[k].astype(mxu_dtype) if k in _MXU_KEYS else params[k]
               for k in _WEIGHT_KEYS]

    kernel = functools.partial(clsloc_head_kernel,
                               roll_like_jnp=_probe_roll_convention())

    def run(single_buffer_consts):
        def const_spec(shape):
            nd = len(shape)
            idx = lambda l, _nd=nd: (0,) * _nd
            if single_buffer_consts:
                # Constant index_map => pipelining buys nothing; single-buffer to halve the
                # weights' VMEM footprint (key on v7x's 64 MiB VMEM at production C=512).
                return pl.BlockSpec(shape, idx, pipeline_mode=pl.Buffered(1))
            return pl.BlockSpec(shape, idx)

        in_specs = [
            pl.BlockSpec(memory_space=pltpu.MemorySpace.SMEM),   # per-level scales
            pl.BlockSpec(memory_space=pltpu.MemorySpace.SMEM),   # per-level valid lengths
            pl.BlockSpec(memory_space=pltpu.MemorySpace.SMEM),   # per-level 1/(T*Cg)
            pl.BlockSpec((1, B, Tmax, C), lambda l: (l, 0, 0, 0)),
        ] + [const_spec(w.shape) for w in weights]

        return pl.pallas_call(
            kernel,
            grid=(L,),
            in_specs=in_specs,
            out_specs=pl.BlockSpec((1, B, Tmax, out_pad), lambda l: (l, 0, 0, 0)),
            out_shape=jax.ShapeDtypeStruct((L, B, Tmax, out_pad), jnp.float32),
            compiler_params=pltpu.CompilerParams(
                dimension_semantics=("parallel",),
                vmem_limit_bytes=48 * 1024 * 1024),
        )(scale_arr, tlen_arr, invn_arr, x_all, *weights)

    try:
        out = run(True)
    except Exception:
        # pipeline_mode=pl.Buffered(1) unsupported on this jax version -> default buffering.
        out = run(False)

    out_offsets = [out[i, :, :Ts[i], 0:2] for i in range(L)]
    out_cls = [out[i, :, :Ts[i], 2:2 + num_classes] for i in range(L)]
    return out_offsets, out_cls


# ----------------------------------------------------------------------------
# Deterministic parameter construction (mirrors init_weights).
# ----------------------------------------------------------------------------
def kaiming_conv(key, c_out, c_in, k):
    # torch kaiming_normal_(mode='fan_out', nonlinearity='relu'): std = sqrt(2/(c_out*k))
    std = math.sqrt(2.0 / (c_out * k))
    return jax.random.normal(key, (c_out, c_in, k), jnp.float32) * std


def _to_taps(w_oik):
    # torch conv weight (Cout, Cin, K=3) -> (K, Cin, Cout); slice [k] multiplies x[t+k-1].
    return jnp.transpose(w_oik, (2, 1, 0))


def make_params(key, C, NC, n_tower=2, groups=32):
    out_pad = _round_up(2 + NC, 128)          # lane-dense fused head width (>=128)
    keys = jax.random.split(key, 2 * n_tower + 2)
    loc_tw_t = jnp.stack([kaiming_conv(keys[l], C, C, 3) for l in range(n_tower)])
    conf_tw_t = jnp.stack([kaiming_conv(keys[n_tower + l], C, C, 3) for l in range(n_tower)])
    loc_hw_t = kaiming_conv(keys[2 * n_tower], 2, C, 3)
    conf_hw_t = kaiming_conv(keys[2 * n_tower + 1], NC, C, 3)

    loc_hw = jnp.zeros((3, C, out_pad), jnp.float32).at[:, :, 0:2].set(_to_taps(loc_hw_t))
    conf_hw = jnp.zeros((3, C, out_pad), jnp.float32).at[:, :, 2:2 + NC].set(_to_taps(conf_hw_t))

    Cg = C // groups
    grp_ids = jnp.arange(C) // Cg
    gm = (grp_ids[:, None] == jnp.arange(groups)[None, :]).astype(jnp.float32)

    return {
        "loc_tw": jnp.stack([_to_taps(loc_tw_t[l]) for l in range(n_tower)]),   # (NT,3,C,C)
        "loc_tb": jnp.zeros((n_tower, 1, C), jnp.float32),
        "loc_g": jnp.ones((n_tower, 1, C), jnp.float32),
        "loc_bt": jnp.zeros((n_tower, 1, C), jnp.float32),
        "conf_tw": jnp.stack([_to_taps(conf_tw_t[l]) for l in range(n_tower)]),
        "conf_tb": jnp.zeros((n_tower, 1, C), jnp.float32),
        "conf_g": jnp.ones((n_tower, 1, C), jnp.float32),
        "conf_bt": jnp.zeros((n_tower, 1, C), jnp.float32),
        "loc_hw": loc_hw,
        "conf_hw": conf_hw,
        "head_b": jnp.zeros((1, out_pad), jnp.float32),   # conv biases init to zero
        "gm": gm,
        "gmt": gm.T,
        "out_pad": out_pad,
        "_groups": groups,
        # torch-layout copies for the pure-JAX reference check
        "_loc_tw_t": loc_tw_t, "_conf_tw_t": conf_tw_t,
        "_loc_hw_t": loc_hw_t, "_conf_hw_t": conf_hw_t,
    }


# ----------------------------------------------------------------------------
# Pure-JAX reference (independent of the kernel), true-f32 precision.
# ----------------------------------------------------------------------------
def ref_forward(fpn_feats_nct, params, scales, num_classes):
    G = params["_groups"]
    prec = lax.Precision.HIGHEST   # full-f32 reference (TPU default may use bf16 passes)

    def conv1d(h, w_oik):  # h: (B,C,T), w: (O,I,K)
        return lax.conv_general_dilated(
            h, w_oik, window_strides=(1,), padding=((1, 1),),
            dimension_numbers=("NCH", "OIH", "NCH"), precision=prec)

    def gn(h):
        B, C, T = h.shape
        hr = h.reshape(B, G, C // G, T)
        mu = hr.mean(axis=(2, 3), keepdims=True)
        var = hr.var(axis=(2, 3), keepdims=True)
        return ((hr - mu) / jnp.sqrt(var + 1e-5)).reshape(B, C, T)  # gamma=1, beta=0

    def tower(h, tw_t):
        for l in range(tw_t.shape[0]):
            h = jnp.maximum(gn(conv1d(h, tw_t[l])), 0.0)
        return h

    offs, clss = [], []
    for i, feat in enumerate(fpn_feats_nct):
        loc_feat = tower(feat, params["_loc_tw_t"])
        conf_feat = tower(feat, params["_conf_tw_t"])
        loc_logits = conv1d(loc_feat, params["_loc_hw_t"])        # (B, 2, T)
        conf_logits = conv1d(conf_feat, params["_conf_hw_t"])     # (B, NC, T)
        offs.append(jnp.transpose(jnp.exp(scales[i] * loc_logits), (0, 2, 1)))
        clss.append(jnp.transpose(conf_logits, (0, 2, 1)))
    return offs, clss


# ----------------------------------------------------------------------------
if __name__ == "__main__":
    B, C, NC = 2, 128, 4          # channels lane-aligned (module default is 512)
    head_layer = 2
    groups = 32
    T_per_level = [16, 8]

    key = jax.random.PRNGKey(0)
    kp, *kx = jax.random.split(key, 1 + head_layer)
    params = make_params(kp, C, NC, n_tower=2, groups=groups)
    scales = [1.0 for _ in range(head_layer)]   # ScaleExp init_value = 1.0

    fpn_feats = [
        0.1 * jax.random.normal(kx[i], (B, C, T_per_level[i]), jnp.float32)
        for i in range(head_layer)
    ]

    out_offsets, out_cls = cls_loc_head_forward(fpn_feats, params, scales, NC,
                                                mxu_dtype=jnp.bfloat16)
    jax.block_until_ready(out_offsets)
    jax.block_until_ready(out_cls)

    ref_offsets, ref_cls = ref_forward(fpn_feats, params, scales, NC)

    # Tolerance rationale: with this (untrained) kaiming fan_out init the head logits have
    # std ~6-8; bf16 MXU operands give an absolute logit error of ~0.05-0.1 (well under 2%
    # of the logit scale).  ScaleExp turns an absolute loc-logit error into the same
    # *relative* error of the offsets, so offsets are compared in log space.
    for i in range(head_layer):
        assert out_offsets[i].shape == (B, T_per_level[i], 2)
        assert out_cls[i].shape == (B, T_per_level[i], NC)
        assert bool(jnp.all(jnp.isfinite(out_offsets[i])))
        assert bool(jnp.all(jnp.isfinite(out_cls[i])))
        assert jnp.allclose(out_cls[i], ref_cls[i], rtol=5e-2, atol=2e-1)
        assert jnp.allclose(jnp.log(out_offsets[i]), jnp.log(ref_offsets[i]),
                            rtol=0.0, atol=3e-1)

    print("KERNEL_OK")
</pallas_src>

<mosaic_0001>
module attributes {stable_mosaic.version = 11 : i64} {
  func.func @k(%arg0: memref<8x128xf32, #tpu.memory_space<vmem>>, %arg1: memref<8x128xf32, #tpu.memory_space<vmem>>) attributes {dimension_semantics = [], scalar_prefetch = 0 : i64, scratch_operands = 0 : i64, tpu.core_type = #tpu.core_type<tc>} {
    %c0 = arith.constant 0 : index
    %c0_0 = arith.constant 0 : index
    %0 = vector.load %arg0[%c0, %c0_0] : memref<8x128xf32, #tpu.memory_space<vmem>>, vector<8x128xf32>
    %c1_i32 = arith.constant 1 : i32
    %1 = tpu.dynamic_rotate %0 by %c1_i32 dim 0 : vector<8x128xf32>, i32 -> vector<8x128xf32>
    %c0_1 = arith.constant 0 : index
    %c0_2 = arith.constant 0 : index
    %2 = vector.load %arg1[%c0_1, %c0_2] : memref<8x128xf32, #tpu.memory_space<vmem>>, vector<8x128xf32>
    tpu.vector_store %arg1[%c0_1, %c0_2], %1 {strides = array<i32>} : memref<8x128xf32, #tpu.memory_space<vmem>>, vector<8x128xf32>,
    return
  }
}

</mosaic_0001>

<bundles_post_ra>
// kernel: tpu_custom_call.1
= control target key start
LH: loop header
LB: loop body
LE: loop exit
PB: predicated region body
PF: predicated region fallthrough
CT: control target
= control target key end

     0   :  { %6 = vsyncpa [#allocation3], 0  ;;  %s115_s0 = inlined_call_operand.hbm [shape: f32[8,128], index: 0, kind: input, shape index: {}]   ;;  %s116_s1 = inlined_call_operand.hbm [shape: f32[8,128], index: 1, kind: output, shape index: {}]  }
   0x1   :  { %7 = vsyncpa [#allocation4], 0  ;;  %s13_s8 = sshll.u32 %s115_s0, 4  ;;  %s97_s9 = smov [#allocation2]   ;;  %s14_s8 = int_to_ptr.hbm [resolvable:$true] %s13_s8 }
   0x2   :  { %s15_s10 = sshll.u32 %s97_s9, 4  ;;  %s16_s10 = int_to_ptr.vmem [resolvable:$true] %s15_s10 }
   0x3   :  { %18 = dma.hbm_to_vmem [thread:$0]  %s14_s8, 128, %s16_s10, [#allocation3]  }
   0x4   :  { %93 = dma.done.wait [#allocation3], 128  }
   0x5   :  { %94 = vsyncadd [#allocation3], 4294967168  ;;  %s98_s11 = smov [#allocation5]   ;;  %s33_s15 = sshll.u32 %s116_s1, 4  ;;  %v23_v0 = vld [vmem:[#allocation2] sm:$0xff]  ;;  %s34_s15 = int_to_ptr.hbm [resolvable:$true] %s33_s15 }
   0x6   :  { %s31_s12 = sshll.u32 %s98_s11, 4  ;;  %v24_v1 = vrot.slane %v23_v0, 7  ;;  %s32_s12 = int_to_ptr.vmem [resolvable:$true] %s31_s12 }
   0x8   :  { %25 = vst [vmem:[#allocation5] sm:$0xff] %v24_v1 }
   0x9   :  { %36 = dma.vmem_to_hbm [thread:$0]  %s32_s12, 128, %s34_s15, [#allocation4]  }
   0xa   :  { %95 = dma.done.wait [#allocation4], 128  }
   0xb   :  { %96 = vsyncadd [#allocation4], 4294967168 }
   0xc   :  { %41 = vsyncpa [#allocation3], 1 }
   0xd   :  { %42 = vsyncpa [#allocation4], 1 }

</bundles_post_ra>
